<compile_context>
chip_gen: v6e
topology: v6e:2x2x1
jax: 0.10.0
libtpu: 0.0.40
codegen_flags: <defaults>
</compile_context>

<pallas_src>
import functools

import jax
import jax.numpy as jnp
from jax.experimental import pallas as pl
from jax.experimental.pallas import tpu as pltpu


def _dice_partial_kernel(x_ref, t_ref, out_ref, *, m_total, tile_cols):
    """One grid step: a (1, C, T) tile -> per-tile partial sums in (1,1,8,128)."""
    j = pl.program_id(1)  # column-tile index

    x = x_ref[...].astype(jnp.float32)  # (1, C, T)
    t = t_ref[...].astype(jnp.float32)  # (1, C, T)

    # Mask columns past the true H*W extent (remainder tile). jnp.where selects,
    # so it also neutralizes any garbage (NaN/Inf) in the padded block tail.
    col = jax.lax.broadcasted_iota(jnp.int32, x.shape, 2)
    valid = (col + j * tile_cols) < m_total
    x = jnp.where(valid, x, 0.0)
    t = jnp.where(valid, t, 0.0)

    # Numerically stable softmax over the channel (sublane) axis; one
    # reciprocal per column, no materialized p = e / s.
    m = jnp.max(x, axis=1, keepdims=True)   # (1, 1, T)
    e = jnp.exp(x - m)                      # (1, C, T)
    s = jnp.sum(e, axis=1, keepdims=True)   # (1, 1, T)
    recip = 1.0 / s                         # (1, 1, T)

    valid_col = valid[:, :1, :]             # (1, 1, T)
    inter_cols = jnp.sum(e * t, axis=1, keepdims=True) * recip
    z_cols = jnp.where(valid_col, s * recip, 0.0)  # softmax column sums (~1)

    intersect = jnp.sum(inter_cols)
    y_sum = jnp.sum(t)
    z_sum = jnp.sum(z_cols)

    # Stash the three scalars in lanes 0..2 of sublane 0 of a lane-dense tile.
    sub = jax.lax.broadcasted_iota(jnp.int32, (1, 1, 8, 128), 2)
    lane = jax.lax.broadcasted_iota(jnp.int32, (1, 1, 8, 128), 3)
    row0 = sub == 0
    out_ref[...] = (
        jnp.where(row0 & (lane == 0), intersect, 0.0)
        + jnp.where(row0 & (lane == 1), y_sum, 0.0)
        + jnp.where(row0 & (lane == 2), z_sum, 0.0)
    )


@functools.partial(jax.jit, static_argnames=("block_cols",))
def dice_loss(inputs, targets, *, block_cols=None):
    """inputs, targets: NCHW arrays (same shape). Returns scalar f32 loss."""
    n, c, h, w = inputs.shape
    assert targets.shape == inputs.shape
    m = h * w

    # Zero-copy layout change: channel axis on sublanes, spatial on lanes.
    x3 = inputs.reshape(n, c, m)
    t3 = targets.reshape(n, c, m)  # dtype cast happens in-kernel

    itemsize = max(jnp.dtype(inputs.dtype).itemsize,
                   jnp.dtype(targets.dtype).itemsize)
    if block_cols is None:
        # ~1 MiB per input block, rounded down to a multiple of 128 lanes.
        block_cols = max(128, ((1 << 20) // (c * itemsize)) // 128 * 128)
    t_cols = min(block_cols, pl.cdiv(m, 128) * 128)
    nt = pl.cdiv(m, t_cols)

    kernel = functools.partial(_dice_partial_kernel, m_total=m, tile_cols=t_cols)

    partials = pl.pallas_call(
        kernel,
        out_shape=jax.ShapeDtypeStruct((n, nt, 8, 128), jnp.float32),
        grid=(n, nt),
        in_specs=[
            pl.BlockSpec((1, c, t_cols), lambda i, j: (i, 0, j)),
            pl.BlockSpec((1, c, t_cols), lambda i, j: (i, 0, j)),
        ],
        out_specs=pl.BlockSpec((1, 1, 8, 128), lambda i, j: (i, j, 0, 0)),
        compiler_params=pltpu.CompilerParams(
            dimension_semantics=("parallel", "parallel"),
        ),
    )(x3, t3)

    # Tiny final reduction + dice formula outside the kernel (keeps the grid
    # fully parallel; partials is only (n * nt) * 4 KiB).
    sums = jnp.sum(partials, axis=(0, 1, 2))   # (128,)
    intersect, y_sum, z_sum = sums[0], sums[1], sums[2]
    smooth = 1e-05
    return 1.0 - (2.0 * intersect + smooth) / (z_sum + y_sum + smooth)


def _reference(inputs, targets):
    smooth = 1e-05
    t = targets.astype(jnp.float32)
    p = jax.nn.softmax(inputs.astype(jnp.float32), axis=1)
    intersect = jnp.sum(p * t)
    y_sum = jnp.sum(t)
    z_sum = jnp.sum(p)
    return 1.0 - (2.0 * intersect + smooth) / (z_sum + y_sum + smooth)


if __name__ == "__main__":
    key = jax.random.PRNGKey(0)
    k1, k2 = jax.random.split(key)

    N, C, H, W = 2, 4, 16, 16
    inputs = jax.random.normal(k1, (N, C, H, W), dtype=jnp.float32)
    # one-hot targets in NCHW (typical segmentation labels)
    labels = jax.random.randint(k2, (N, H, W), 0, C)
    targets = jnp.transpose(
        jax.nn.one_hot(labels, C, dtype=jnp.float32), (0, 3, 1, 2)
    )

    loss = dice_loss(inputs, targets)
    loss = jax.block_until_ready(loss)

    ref = _reference(inputs, targets)
    assert jnp.allclose(loss, ref, atol=1e-5, rtol=1e-5), (loss, ref)

    print("KERNEL_OK")
</pallas_src>

<mosaic_0001>
module attributes {stable_mosaic.version = 11 : i64} {
  func.func @_dice_partial_kernel(%arg0: i32, %arg1: i32, %arg2: memref<1x4x256xf32, #tpu.memory_space<vmem>>, %arg3: memref<1x4x256xf32, #tpu.memory_space<vmem>>, %arg4: memref<1x1x8x128xf32, #tpu.memory_space<vmem>>) attributes {dimension_semantics = [#tpu.dimension_semantics<parallel>, #tpu.dimension_semantics<parallel>], iteration_bounds = array<i64: 2, 1>, scalar_prefetch = 0 : i64, scratch_operands = 0 : i64, tpu.core_type = #tpu.core_type<tc>, window_params = [{transform_indices = @transform_0, window_bounds = array<i64: 1, 4, 256>}, {transform_indices = @transform_1, window_bounds = array<i64: 1, 4, 256>}, {transform_indices = @transform_2, window_bounds = array<i64: 1, 1, 8, 128>}]} {
    %c0 = arith.constant 0 : index
    %c0_0 = arith.constant 0 : index
    %c0_1 = arith.constant 0 : index
    %0 = vector.load %arg2[%c0, %c0_0, %c0_1] : memref<1x4x256xf32, #tpu.memory_space<vmem>>, vector<1x4x256xf32>
    %c0_2 = arith.constant 0 : index
    %c0_3 = arith.constant 0 : index
    %c0_4 = arith.constant 0 : index
    %1 = vector.load %arg3[%c0_2, %c0_3, %c0_4] : memref<1x4x256xf32, #tpu.memory_space<vmem>>, vector<1x4x256xf32>
    %2 = tpu.iota {dimensions = array<i32: 2>} : vector<1x4x256xi32>
    %c256_i32 = arith.constant 256 : i32
    %3 = arith.muli %arg1, %c256_i32 : i32
    %4 = vector.broadcast %3 : i32 to vector<1x4x256xi32>
    %5 = arith.addi %2, %4 : vector<1x4x256xi32>
    %c256_i32_5 = arith.constant 256 : i32
    %6 = vector.broadcast %c256_i32_5 : i32 to vector<1x4x256xi32>
    %7 = arith.cmpi slt, %5, %6 : vector<1x4x256xi32>
    %cst = arith.constant 0.000000e+00 : f32
    %8 = vector.broadcast %cst : f32 to vector<1x4x256xf32>
    %9 = arith.select %7, %0, %8 : vector<1x4x256xi1>, vector<1x4x256xf32>
    %cst_6 = arith.constant 0.000000e+00 : f32
    %10 = vector.broadcast %cst_6 : f32 to vector<1x4x256xf32>
    %11 = arith.select %7, %1, %10 : vector<1x4x256xi1>, vector<1x4x256xf32>
    %cst_7 = arith.constant dense<0xFF800000> : vector<1x256xf32>
    %12 = vector.multi_reduction <maximumf>, %9, %cst_7 [1] : vector<1x4x256xf32> to vector<1x256xf32>
    %13 = vector.shape_cast %12 : vector<1x256xf32> to vector<1x1x256xf32>
    %14 = vector.broadcast %13 : vector<1x1x256xf32> to vector<1x4x256xf32>
    %15 = arith.subf %9, %14 : vector<1x4x256xf32>
    %16 = math.exp %15 : vector<1x4x256xf32>
    %cst_8 = arith.constant dense<0.000000e+00> : vector<1x256xf32>
    %17 = vector.multi_reduction <add>, %16, %cst_8 [1] : vector<1x4x256xf32> to vector<1x256xf32>
    %18 = vector.shape_cast %17 : vector<1x256xf32> to vector<1x1x256xf32>
    %cst_9 = arith.constant 1.000000e+00 : f32
    %19 = vector.broadcast %cst_9 : f32 to vector<1x1x256xf32>
    %20 = arith.divf %19, %18 : vector<1x1x256xf32>
    %21 = vector.extract_strided_slice %7 {offsets = [0, 0, 0], sizes = [1, 1, 256], strides = [1, 1, 1]} : vector<1x4x256xi1> to vector<1x1x256xi1>
    %22 = arith.mulf %16, %11 : vector<1x4x256xf32>
    %cst_10 = arith.constant dense<0.000000e+00> : vector<1x256xf32>
    %23 = vector.multi_reduction <add>, %22, %cst_10 [1] : vector<1x4x256xf32> to vector<1x256xf32>
    %24 = vector.shape_cast %23 : vector<1x256xf32> to vector<1x1x256xf32>
    %25 = arith.mulf %24, %20 : vector<1x1x256xf32>
    %26 = arith.mulf %18, %20 : vector<1x1x256xf32>
    %cst_11 = arith.constant 0.000000e+00 : f32
    %27 = vector.broadcast %cst_11 : f32 to vector<1x1x256xf32>
    %28 = arith.select %21, %26, %27 : vector<1x1x256xi1>, vector<1x1x256xf32>
    %29 = vector.shape_cast %25 : vector<1x1x256xf32> to vector<1x1x1x256xf32>
    %cst_12 = arith.constant dense<0.000000e+00> : vector<1xf32>
    %30 = vector.multi_reduction <add>, %29, %cst_12 [1, 2, 3] : vector<1x1x1x256xf32> to vector<1xf32>
    %31 = vector.shape_cast %30 : vector<1xf32> to vector<1x1x1x1xf32>
    %32 = vector.extract %31[0, 0, 0, 0] : f32 from vector<1x1x1x1xf32>
    %33 = vector.shape_cast %11 : vector<1x4x256xf32> to vector<1x1x4x256xf32>
    %cst_13 = arith.constant dense<0.000000e+00> : vector<1xf32>
    %34 = vector.multi_reduction <add>, %33, %cst_13 [1, 2, 3] : vector<1x1x4x256xf32> to vector<1xf32>
    %35 = vector.shape_cast %34 : vector<1xf32> to vector<1x1x1x1xf32>
    %36 = vector.extract %35[0, 0, 0, 0] : f32 from vector<1x1x1x1xf32>
    %37 = vector.shape_cast %28 : vector<1x1x256xf32> to vector<1x1x1x256xf32>
    %cst_14 = arith.constant dense<0.000000e+00> : vector<1xf32>
    %38 = vector.multi_reduction <add>, %37, %cst_14 [1, 2, 3] : vector<1x1x1x256xf32> to vector<1xf32>
    %39 = vector.shape_cast %38 : vector<1xf32> to vector<1x1x1x1xf32>
    %40 = vector.extract %39[0, 0, 0, 0] : f32 from vector<1x1x1x1xf32>
    %41 = tpu.iota {dimensions = array<i32: 2>} : vector<1x1x8x128xi32>
    %42 = tpu.iota {dimensions = array<i32: 3>} : vector<1x1x8x128xi32>
    %c0_i32 = arith.constant 0 : i32
    %43 = vector.broadcast %c0_i32 : i32 to vector<1x1x8x128xi32>
    %44 = arith.cmpi eq, %41, %43 : vector<1x1x8x128xi32>
    %c0_i32_15 = arith.constant 0 : i32
    %45 = vector.broadcast %c0_i32_15 : i32 to vector<1x1x8x128xi32>
    %46 = arith.cmpi eq, %42, %45 : vector<1x1x8x128xi32>
    %47 = arith.andi %44, %46 : vector<1x1x8x128xi1>
    %cst_16 = arith.constant 0.000000e+00 : f32
    %48 = vector.broadcast %32 : f32 to vector<1x1x8x128xf32>
    %49 = vector.broadcast %cst_16 : f32 to vector<1x1x8x128xf32>
    %50 = arith.select %47, %48, %49 : vector<1x1x8x128xi1>, vector<1x1x8x128xf32>
    %c1_i32 = arith.constant 1 : i32
    %51 = vector.broadcast %c1_i32 : i32 to vector<1x1x8x128xi32>
    %52 = arith.cmpi eq, %42, %51 : vector<1x1x8x128xi32>
    %53 = arith.andi %44, %52 : vector<1x1x8x128xi1>
    %cst_17 = arith.constant 0.000000e+00 : f32
    %54 = vector.broadcast %36 : f32 to vector<1x1x8x128xf32>
    %55 = vector.broadcast %cst_17 : f32 to vector<1x1x8x128xf32>
    %56 = arith.select %53, %54, %55 : vector<1x1x8x128xi1>, vector<1x1x8x128xf32>
    %57 = arith.addf %50, %56 : vector<1x1x8x128xf32>
    %c2_i32 = arith.constant 2 : i32
    %58 = vector.broadcast %c2_i32 : i32 to vector<1x1x8x128xi32>
    %59 = arith.cmpi eq, %42, %58 : vector<1x1x8x128xi32>
    %60 = arith.andi %44, %59 : vector<1x1x8x128xi1>
    %cst_18 = arith.constant 0.000000e+00 : f32
    %61 = vector.broadcast %40 : f32 to vector<1x1x8x128xf32>
    %62 = vector.broadcast %cst_18 : f32 to vector<1x1x8x128xf32>
    %63 = arith.select %60, %61, %62 : vector<1x1x8x128xi1>, vector<1x1x8x128xf32>
    %64 = arith.addf %57, %63 : vector<1x1x8x128xf32>
    %c0_19 = arith.constant 0 : index
    %c0_20 = arith.constant 0 : index
    %c0_21 = arith.constant 0 : index
    %c0_22 = arith.constant 0 : index
    %65 = vector.load %arg4[%c0_19, %c0_20, %c0_21, %c0_22] : memref<1x1x8x128xf32, #tpu.memory_space<vmem>>, vector<1x1x8x128xf32>
    tpu.vector_store %arg4[%c0_19, %c0_20, %c0_21, %c0_22], %64 {strides = array<i32>} : memref<1x1x8x128xf32, #tpu.memory_space<vmem>>, vector<1x1x8x128xf32>,
    return
  }
  func.func @transform_0(%arg0: i32, %arg1: i32) -> (i32, i32, i32) {
    %c0_i32 = arith.constant 0 : i32
    %c0_i32_0 = arith.constant 0 : i32
    return %arg0, %c0_i32, %arg1 : i32, i32, i32
  }
  func.func @transform_1(%arg0: i32, %arg1: i32) -> (i32, i32, i32) {
    %c0_i32 = arith.constant 0 : i32
    %c0_i32_0 = arith.constant 0 : i32
    return %arg0, %c0_i32, %arg1 : i32, i32, i32
  }
  func.func @transform_2(%arg0: i32, %arg1: i32) -> (i32, i32, i32, i32) {
    %c0_i32 = arith.constant 0 : i32
    %c0_i32_0 = arith.constant 0 : i32
    %c0_i32_1 = arith.constant 0 : i32
    return %arg0, %arg1, %c0_i32, %c0_i32_0 : i32, i32, i32, i32
  }
}

</mosaic_0001>

<bundles_post_ra>
// kernel: dice_loss.1
= control target key start
LH: loop header
LB: loop body
LE: loop exit
PB: predicated region body
PF: predicated region fallthrough
CT: control target
= control target key end

     0   :  { %s539_s9 = smov 0   ;;  %s541_s10 = smov 0   ;;  %s588_s0 = inlined_call_operand.vmem [shape: f32[2,4,256], index: 0, kind: input, shape index: {}]   ;;  %s589_s1 = inlined_call_operand.vmem [shape: f32[2,4,256], index: 1, kind: input, shape index: {}]   ;;  %s590_s2 = inlined_call_operand.vmem [shape: f32[2,1,8,128], index: 2, kind: output, shape index: {}]  }
   0x1   :  { %s543_s11 = smov 0  }
   0x2 LB: > { %s24_s12 = sadd.s32 1, %s518_s10  ;;  %p450_p0 = scmp.ge.s32.totalorder %s522_s11, 1  ;;  %s522_s11 = sphi %s543_s11, %s12_s11   ;;  %s518_s10 = sphi %s541_s10, %s592_s10   ;;  %s514_s9 = sphi %s539_s9, %s591_s9  }
   0x3   : > { %p26_p1 = scmp.ge.s32.totalorder %s24_s12, 2  ;;  %p150_p2 = scmp.lt.s32.totalorder %s522_s11, 3 }
   0x5   : > { %s594_s12 = smov (%p26_p1, %s24_s12), 0  ;;  %p151_p3 = pnand %p450_p0, %p150_p2 }
   0x6   : > { %p188_p4 = scmp.lt.s32.totalorder (!%p151_p3), %s514_s9, 1 }
   0x7   : > { %154 = sbr.rel (%p151_p3) target bundleno = 292 (0x124), region = 28 }
   0xc   : > { %s596_s9 = smov (!%p188_p4, %s514_s9), 1  ;;  %vm235_vm0 = vcmask 1043456   ;;  %vm296_vm1 = vcmask 1040384  }
   0xd   : > { %s557_s13 = sshll.u32 %s596_s9, 3 }
   0xe   : > { %s195_s16 = scalar_lea.vmem %s588_s0, %s557_s13  ;;  %s205_s19 = scalar_lea.vmem %s589_s1, %s557_s13 }
   0xf   : > { %v214_v0 = vld [vmem:[%s195_s16] sm:$0xff]  ;;  %s213_s25 = scalar_lea.vmem %s590_s2, %s557_s13 }
  0x10   : > { %v226_v1 = vcombine.high %v214_v0, %v214_v0  ;;  %v236_v2 = vsel %vm235_vm0, %v214_v0, -inf  ;;  %v215_v20 = vld [vmem:[%s205_s19] sm:$0xff] }
  0x11   : > { %v237_v3 = vrot.slane %v236_v2, 4  ;;  %v231_v21 = vcombine.high %v215_v20, %v215_v20 }
  0x12   : > { %v243_v4 = vsel %vm235_vm0, %v226_v1, -inf }
  0x13   : > { %v238_v5 = vmax.f32 %v236_v2, %v237_v3  ;;  %v244_v6 = vrot.slane %v243_v4, 4 }
  0x15   : > { %v239_v7 = vrot.slane %v238_v5, 2  ;;  %v245_v8 = vmax.f32 %v243_v4, %v244_v6 }
  0x17   : > { %v240_v9 = vmax.f32 %v238_v5, %v239_v7  ;;  %v246_v10 = vrot.slane %v245_v8, 2 }
  0x19   : > { %v241_v11 = vrot.slane %v240_v9, 1  ;;  %v247_v12 = vmax.f32 %v245_v8, %v246_v10 }
  0x1b   : > { %v242_v13 = vmax.f32 %v240_v9, %v241_v11  ;;  %v248_v14 = vrot.slane %v247_v12, 1 }
  0x1d   : > { %v249_v15 = vmax.f32 %v247_v12, %v248_v14  ;;  %v250_v16 = vsub.f32 %v214_v0, %v242_v13  ;;  %v309_v0 = vsel %vm235_vm0, %v215_v20, 0.0 }
  0x1f   : > { %v251_v17 = vsub.f32 %v226_v1, %v249_v15  ;;  %v252_v18 = vmul.f32 1.442695, %v250_v16  ;;  %v310_v1 = vsel %vm235_vm0, %v231_v21, 0.0 }
  0x20   : > { %v311_v4 = vadd.f32 %v310_v1, %v309_v0 }
  0x21   : > { %492 = vpow2.f32 %v252_v18  ;;  %v254_v19 = vmul.f32 1.442695, %v251_v17 }
  0x23   : > { %494 = vpow2.f32 %v254_v19 }
  0x2e   : > { %v493_v22 = vpop.eup %492 }
  0x2f   : > { %v256_v23 = vsel %vm235_vm0, %v493_v22, 0.0  ;;  %v274_v24 = vmul.f32 %v493_v22, %v215_v20 }
  0x30   : > { %v495_v25 = vpop.eup %494  ;;  %v257_v26 = vrot.slane %v256_v23, 4 }
  0x31   : > { %v263_v27 = vsel %vm235_vm0, %v495_v25, 0.0  ;;  %v275_v28 = vmul.f32 %v495_v25, %v231_v21  ;;  %v276_v29 = vsel %vm235_vm0, %v274_v24, 0.0 }
  0x32   : > { %v258_v30 = vadd.f32 %v257_v26, %v256_v23  ;;  %v264_v31 = vrot.slane %v263_v27, 4  ;;  %v277_v32 = vrot.slane %v276_v29, 4  ;;  %v216_v26 = vlaneseq }
  0x33   : > { %v283_v33 = vsel %vm235_vm0, %v275_v28, 0.0 }
  0x34   : > { %v259_v34 = vrot.slane %v258_v30, 2  ;;  %v265_v35 = vadd.f32 %v264_v31, %v263_v27  ;;  %v284_v36 = vrot.slane %v283_v33, 4  ;;  %v278_v39 = vadd.f32 %v277_v32, %v276_v29 }
  0x35   : > { %v217_v27 = vand.u32 127, %v216_v26  ;;  %v334_v28 = vshrl.u32 %v216_v26, 7 }
  0x36   : > { %v260_v37 = vadd.f32 %v259_v34, %v258_v30  ;;  %v266_v38 = vrot.slane %v265_v35, 2  ;;  %v285_v42 = vadd.f32 %v284_v36, %v283_v33  ;;  %v279_v45 = vrot.slane %v278_v39, 2 }
  0x37   : > { %vm335_vm2 = vcmp.eq.s32.totalorder %v334_v28, 0  ;;  %vm336_vm3 = vcmp.eq.s32.totalorder %v217_v27, 0  ;;  %vm340_vm4 = vcmp.eq.s32.totalorder %v217_v27, 1  ;;  %vm345_vm6 = vcmp.eq.s32.totalorder %v217_v27, 2 }
  0x38   : > { %v261_v40 = vrot.slane %v260_v37, 1  ;;  %v267_v41 = vadd.f32 %v266_v38, %v265_v35  ;;  %v286_v47 = vrot.slane %v285_v42, 2  ;;  %v280_v48 = vadd.f32 %v279_v45, %v278_v39  ;;  %vm337_vm5 = vmand %vm335_vm2, %vm336_vm3 }
  0x39   : > { %vm341_vm7 = vmand %vm335_vm2, %vm340_vm4 }
  0x3a   : > { %v262_v43 = vadd.f32 %v261_v40, %v260_v37  ;;  %v268_v44 = vrot.slane %v267_v41, 1  ;;  %v287_v49 = vadd.f32 %v286_v47, %v285_v42  ;;  %v281_v50 = vrot.slane %v280_v48, 1  ;;  %vm346_vm8 = vmand %vm335_vm2, %vm345_vm6 }
  0x3c   : > { %v269_v46 = vadd.f32 %v268_v44, %v267_v41  ;;  %496 = vrcp.f32 %v262_v43  ;;  %v288_v51 = vrot.slane %v287_v49, 1  ;;  %v282_v52 = vadd.f32 %v281_v50, %v280_v48 }
  0x3e   : > { %498 = vrcp.f32 %v269_v46  ;;  %v289_v53 = vadd.f32 %v288_v51, %v287_v49 }
  0x49   : > { %v497_v54 = vpop.eup %496 }
  0x4a   : > { %v292_v55 = vmul.f32 %v497_v54, %v262_v43  ;;  %v290_v56 = vmul.f32 %v497_v54, %v282_v52 }
  0x4b   : > { %v499_v57 = vpop.eup %498 }
  0x4c   : > { %v293_v58 = vmul.f32 %v499_v57, %v269_v46  ;;  %v321_v59 = vsel %vm296_vm1, %v292_v55, 0.0  ;;  %v291_v60 = vmul.f32 %v499_v57, %v289_v53  ;;  %v297_v61 = vsel %vm296_vm1, %v290_v56, 0.0 }
  0x4e   : > { %v322_v62 = vsel %vm296_vm1, %v293_v58, 0.0  ;;  %v298_v63 = vsel %vm296_vm1, %v291_v60, 0.0 }
  0x4f   : > { %v323_v2 = vadd.f32 %v322_v62, %v321_v59  ;;  %v299_v3 = vadd.f32 %v298_v63, %v297_v61 }
  0x51   : > { %324 = vadd.xlane.f32.xlu1 %v323_v2  ;;  %300 = vadd.xlane.f32.xlu0 %v299_v3 }
  0x55   : > { %312 = vadd.xlane.f32.xlu0 %v311_v4 }
  0xda   : > { %v325_v5 = vpop.xlane.xlu1 %324  ;;  %v301_v6 = vpop.xlane.xlu0 %300 }
  0xdb   : > { %v326_v7 = vrot.slane %v325_v5, 4  ;;  %v302_v8 = vrot.slane %v301_v6, 4 }
  0xdd   : > { %v327_v9 = vadd.f32 %v326_v7, %v325_v5  ;;  %v303_v10 = vadd.f32 %v302_v8, %v301_v6 }
  0xde   : > { %v313_v11 = vpop.xlane.xlu0 %312 }
  0xdf   : > { %v328_v12 = vrot.slane %v327_v9, 2  ;;  %v304_v13 = vrot.slane %v303_v10, 2  ;;  %v314_v14 = vrot.slane %v313_v11, 4 }
  0xe1   : > { %v315_v15 = vadd.f32 %v314_v14, %v313_v11  ;;  %v305_v16 = vadd.f32 %v304_v13, %v303_v10  ;;  %v329_v17 = vadd.f32 %v328_v12, %v327_v9 }
  0xe3   : > { %v316_v18 = vrot.slane %v315_v15, 2  ;;  %v306_v19 = vrot.slane %v305_v16, 1  ;;  %v330_v22 = vrot.slane %v329_v17, 1 }
  0xe5   : > { %v317_v20 = vadd.f32 %v316_v18, %v315_v15  ;;  %v307_v21 = vadd.f32 %v306_v19, %v305_v16  ;;  %v331_v25 = vadd.f32 %v330_v22, %v329_v17 }
  0xe7   : > { %460 = vpush %v307_v21  ;;  %v318_v23 = vrot.slane %v317_v20, 1 }
  0xe9   : > { %v319_v24 = vadd.f32 %v318_v23, %v317_v20 }
  0xeb   : > { %462 = vpush %v319_v24 }
  0xec   : > { %464 = vpush %v331_v25 }
 0x118   : > { %s461_s20 = spop %460 }
 0x119   : > { %v338_v29 = vstv %s461_s20 }
 0x11a   : > { %v339_v31 = vsel %vm337_vm5, %v338_v29, 0.0 }
 0x11c   : > { %s463_s21 = spop %462 }
 0x11d   : > { %v342_v30 = vstv %s463_s21  ;;  %s465_s22 = spop %464 }
 0x11e   : > { %v343_v32 = vsel %vm341_vm7, %v342_v30, 0.0  ;;  %v347_v33 = vstv %s465_s22 }
 0x11f   : > { %v344_v34 = vadd.f32 %v343_v32, %v339_v31  ;;  %v348_v35 = vsel %vm346_vm8, %v347_v33, 0.0 }
 0x121   : > { %v349_v36 = vadd.f32 %v348_v35, %v344_v34 }
 0x123   : > { %350 = vst [vmem:[%s213_s25] sm:$0xff] %v349_v36 }
 0x124 PF: > { %s12_s11 = sadd.s32 1, %s522_s11   ;;  %s591_s9 = smov %s518_s10 }
 0x125   : > { %p9_p5 = scmp.ge.s32.totalorder %s12_s11, 4   ;;  %s592_s10 = smov %s594_s12 }
 0x127   :  { %11 = sbr.rel (!%p9_p5) target bundleno = 2 (0x2), region = 61 }

</bundles_post_ra>
